<compile_context>
chip_gen: v5e
topology: v5e:2x2
jax: 0.10.0
libtpu: 0.0.40
codegen_flags: <defaults>
</compile_context>

<pallas_src>
import jax
import jax.numpy as jnp
from jax.experimental import pallas as pl
from jax.experimental.pallas import tpu as pltpu


def _sigmoid_rescale_kernel(x_ref, o_ref):
    # 2*sigmoid(x) - 1 == tanh(x/2): single EUP op + one VALU mul, f32 accuracy.
    x = x_ref[...].astype(jnp.float32)
    o_ref[...] = jnp.tanh(0.5 * x).astype(o_ref.dtype)


_LANE_CANDIDATES = (4096, 2048, 1024, 512, 256, 128)
_TARGET_BLOCK_BYTES = 2 * 1024 * 1024  # ~2 MiB/block: roofline-sized, v5e-VMEM safe.


def _sublane_multiple(itemsize):
    # f32 -> 8, bf16 -> 16, int8/fp8 -> 32 rows per native tile.
    return max(8, 32 // max(1, itemsize))


def _pick_tile_rows(rows, lane, itemsize):
    sub = _sublane_multiple(itemsize)
    if rows <= sub:
        return rows  # block equals the full rows dim -> always legal
    target = max(sub, (_TARGET_BLOCK_BYTES // (lane * itemsize)) // sub * sub)
    target = min(target, (rows // sub) * sub)
    # Prefer a tile that divides rows exactly (no partial boundary block).
    t = target
    while t >= sub:
        if rows % t == 0:
            return t
        t -= sub
    return target  # partial boundary block; safe for a pure elementwise op


def _pallas_sigmoid_rescale_2d(slab, tile_rows):
    rows, lane = slab.shape
    itemsize = jnp.dtype(slab.dtype).itemsize
    n = rows * lane
    block_bytes = tile_rows * lane * itemsize
    # 2 input + 2 output double-buffers plus headroom.
    vmem_limit = int(min(64 * 1024 * 1024, max(16 * 1024 * 1024, 6 * block_bytes)))
    cost = pl.CostEstimate(
        flops=2 * n,
        transcendentals=n,
        bytes_accessed=2 * n * itemsize,
    )
    return pl.pallas_call(
        _sigmoid_rescale_kernel,
        out_shape=jax.ShapeDtypeStruct((rows, lane), slab.dtype),
        grid_spec=pltpu.PrefetchScalarGridSpec(
            num_scalar_prefetch=0,
            grid=(pl.cdiv(rows, tile_rows),),
            in_specs=[pl.BlockSpec((tile_rows, lane), lambda i: (i, 0))],
            out_specs=pl.BlockSpec((tile_rows, lane), lambda i: (i, 0)),
        ),
        compiler_params=pltpu.CompilerParams(
            dimension_semantics=("parallel",),
            vmem_limit_bytes=vmem_limit,
        ),
        cost_estimate=cost,
    )(slab)


def sigmoid_rescaler(x, *, use_pallas=None, min_pallas_elems=64 * 1024):
    """y = 2*sigmoid(x) - 1 (== tanh(x/2)), elementwise. Any shape (NCHW expected)."""
    n = x.size
    if use_pallas is None:
        use_pallas = n >= min_pallas_elems
    if (not use_pallas) or n == 0:
        # Tiny tensors: let XLA fuse this with the producing conv/LSTM op instead
        # of paying kernel-launch + layout plumbing overhead.
        return jnp.tanh(0.5 * x.astype(jnp.float32)).astype(x.dtype)

    orig_shape = x.shape
    itemsize = jnp.dtype(x.dtype).itemsize
    flat = x.reshape(-1)  # contiguous reshape: no HBM copy

    lane = next((c for c in _LANE_CANDIDATES if n % c == 0), None)
    if lane is None:
        # Rare path: size not a multiple of 128 -> one pad + one slice.
        lane = 1024 if n >= 1024 else 128
        n_pad = pl.cdiv(n, lane) * lane
        flat = jnp.pad(flat, (0, n_pad - n))
    else:
        n_pad = n

    rows = n_pad // lane
    slab = flat.reshape(rows, lane)
    tile_rows = _pick_tile_rows(rows, lane, itemsize)
    out = _pallas_sigmoid_rescale_2d(slab, tile_rows)

    if n_pad != n:
        out = out.reshape(-1)[:n]
    return out.reshape(orig_shape)


if __name__ == "__main__":
    key = jax.random.PRNGKey(0)
    k1, k2 = jax.random.split(key)

    # Small NCHW input matching the ConvLSTM-AE output convention; force the
    # Pallas path so the kernel itself is exercised.
    x_small = jax.random.normal(k1, (2, 4, 16, 16), dtype=jnp.float32)
    y_small = jax.block_until_ready(sigmoid_rescaler(x_small, use_pallas=True))
    ref_small = 2.0 * jax.nn.sigmoid(x_small) - 1.0
    assert y_small.shape == x_small.shape and y_small.dtype == x_small.dtype
    assert jnp.max(jnp.abs(y_small - ref_small)) < 1e-5

    # Larger input exercising the multi-block, lane-dense, 2 MiB-tile path
    # (auto-dispatches to Pallas above the size threshold).
    x_big = jax.random.normal(k2, (2, 16, 128, 256), dtype=jnp.float32)
    y_big = jax.block_until_ready(sigmoid_rescaler(x_big))
    ref_big = 2.0 * jax.nn.sigmoid(x_big) - 1.0
    assert y_big.shape == x_big.shape and y_big.dtype == x_big.dtype
    assert jnp.max(jnp.abs(y_big - ref_big)) < 1e-5

    print("KERNEL_OK")
</pallas_src>

<mosaic_0001>
module attributes {stable_mosaic.version = 11 : i64} {
  func.func @_sigmoid_rescale_kernel(%arg0: i32, %arg1: memref<1x2048xf32, #tpu.memory_space<vmem>>, %arg2: memref<1x2048xf32, #tpu.memory_space<vmem>>) attributes {dimension_semantics = [#tpu.dimension_semantics<parallel>], iteration_bounds = array<i64: 1>, scalar_prefetch = 0 : i64, scratch_operands = 0 : i64, tpu.core_type = #tpu.core_type<tc>, window_params = [{transform_indices = @transform_0, window_bounds = array<i64: 1, 2048>}, {transform_indices = @transform_1, window_bounds = array<i64: 1, 2048>}]} {
    %c0 = arith.constant 0 : index
    %c0_0 = arith.constant 0 : index
    %0 = vector.load %arg1[%c0, %c0_0] : memref<1x2048xf32, #tpu.memory_space<vmem>>, vector<1x2048xf32>
    %cst = arith.constant 5.000000e-01 : f32
    %1 = vector.broadcast %cst : f32 to vector<1x2048xf32>
    %2 = arith.mulf %1, %0 : vector<1x2048xf32>
    %3 = math.tanh %2 : vector<1x2048xf32>
    %c0_1 = arith.constant 0 : index
    %c0_2 = arith.constant 0 : index
    %4 = vector.load %arg2[%c0_1, %c0_2] : memref<1x2048xf32, #tpu.memory_space<vmem>>, vector<1x2048xf32>
    tpu.vector_store %arg2[%c0_1, %c0_2], %3 {strides = array<i32>} : memref<1x2048xf32, #tpu.memory_space<vmem>>, vector<1x2048xf32>,
    return
  }
  func.func @transform_0(%arg0: i32) -> (i32, i32) {
    %c0_i32 = arith.constant 0 : i32
    %c0_i32_0 = arith.constant 0 : i32
    return %arg0, %c0_i32 : i32, i32
  }
  func.func @transform_1(%arg0: i32) -> (i32, i32) {
    %c0_i32 = arith.constant 0 : i32
    %c0_i32_0 = arith.constant 0 : i32
    return %arg0, %c0_i32 : i32, i32
  }
}

</mosaic_0001>

<bundles_post_ra>
// kernel: tpu_custom_call.1
= control target key start
LH: loop header
LB: loop body
LE: loop exit
PB: predicated region body
PF: predicated region fallthrough
CT: control target
= control target key end

     0   :  { %6 = vsyncpa [#allocation3], 0  ;;  %s124_s0 = inlined_call_operand.hbm [shape: f32[1,2048], index: 0, kind: input, shape index: {}]   ;;  %s125_s1 = inlined_call_operand.hbm [shape: f32[1,2048], index: 1, kind: output, shape index: {}]  }
   0x1   :  { %7 = vsyncpa [#allocation4], 0  ;;  %s13_s8 = sshll.u32 %s124_s0, 4  ;;  %s106_s9 = smov [#allocation2]   ;;  %s14_s8 = int_to_ptr.hbm [resolvable:$true] %s13_s8 }
   0x2   :  { %s15_s10 = sshll.u32 %s106_s9, 4  ;;  %s16_s10 = int_to_ptr.vmem [resolvable:$true] %s15_s10 }
   0x3   :  { %18 = dma.hbm_to_vmem [thread:$0]  %s14_s8, 256, %s16_s10, [#allocation3]  }
   0x4   :  { %102 = dma.done.wait [#allocation3], 256  }
   0x5   :  { %103 = vsyncadd [#allocation3], 4294967040  ;;  %v23_v0 = vld [vmem:[#allocation2] sm:$0xff]  ;;  %v24_v1 = vld [vmem:[#allocation2 + $0x8] sm:$0xff]  ;;  %s107_s11 = smov [#allocation5]   ;;  %s38_s15 = sshll.u32 %s125_s1, 4  ;;  %s39_s15 = int_to_ptr.hbm [resolvable:$true] %s38_s15 }
   0x6   :  { %v25_v2 = vmul.f32 0.5, %v23_v0  ;;  %v26_v3 = vmul.f32 0.5, %v24_v1  ;;  %s36_s12 = sshll.u32 %s107_s11, 4  ;;  %s37_s12 = int_to_ptr.vmem [resolvable:$true] %s36_s12 }
   0x8   :  { %50 = vtanh.f32 %v25_v2 }
   0x9   :  { %52 = vtanh.f32 %v26_v3 }
   0xe   :  { %v51_v4 = vpop.eup %50 }
   0xf   :  { %v53_v5 = vpop.eup %52  ;;  %29 = vst [vmem:[#allocation5] sm:$0xff] %v51_v4 }
  0x10   :  { %30 = vst [vmem:[#allocation5 + $0x8] sm:$0xff] %v53_v5 }
  0x11   :  { %41 = dma.vmem_to_hbm [thread:$0]  %s37_s12, 256, %s39_s15, [#allocation4]  }
  0x12   :  { %104 = dma.done.wait [#allocation4], 256  }
  0x13   :  { %105 = vsyncadd [#allocation4], 4294967040 }
  0x14   :  { %46 = vsyncpa [#allocation3], 1 }
  0x15   :  { %47 = vsyncpa [#allocation4], 1 }

</bundles_post_ra>
